<compile_context>
chip_gen: v7x
topology: tpu7x:2x2x1
jax: 0.10.0
libtpu: 0.0.40
codegen_flags: <defaults>
</compile_context>

<pallas_src>
import functools
import math

import jax
import jax.numpy as jnp
from jax.experimental import pallas as pl
from jax.experimental.pallas import tpu as pltpu


# ---------------------------------------------------------------------------
# Kernels — generic path: x viewed as (P, C, Q), reduce the middle axis.
# ---------------------------------------------------------------------------
def _kernel_mid_single(x_ref, o_ref, *, acc_dtype):
    # Whole reduction axis in one block: no scratch, no init/finalize.
    o_ref[...] = jnp.sum(x_ref[...], axis=1, dtype=acc_dtype).astype(o_ref.dtype)


def _kernel_mid_inplace(x_ref, o_ref):
    # Chunked reduction, out dtype == acc dtype: accumulate into the resident
    # output block (no scratch, no final copy).
    @pl.when(pl.program_id(2) == 0)
    def _():
        o_ref[...] = jnp.zeros_like(o_ref)

    o_ref[...] += jnp.sum(x_ref[...], axis=1, dtype=o_ref.dtype)


def _kernel_mid_scratch(x_ref, o_ref, acc_ref):
    # Chunked reduction with a wide accumulator (bf16 / int8 inputs).
    ci = pl.program_id(2)

    @pl.when(ci == 0)
    def _():
        acc_ref[...] = jnp.zeros_like(acc_ref)

    acc_ref[...] += jnp.sum(x_ref[...], axis=1, dtype=acc_ref.dtype)

    @pl.when(ci == pl.num_programs(2) - 1)
    def _():
        o_ref[...] = acc_ref[...].astype(o_ref.dtype)


# ---------------------------------------------------------------------------
# Kernels — trailing-axis path (Q == 1): x viewed as (P, C), C on lanes.
# ---------------------------------------------------------------------------
def _kernel_lane_single(x_ref, o_ref, *, acc_dtype):
    o_ref[...] = jnp.sum(
        x_ref[...], axis=1, keepdims=True, dtype=acc_dtype
    ).astype(o_ref.dtype)


def _kernel_lane_inplace(x_ref, o_ref):
    @pl.when(pl.program_id(1) == 0)
    def _():
        o_ref[...] = jnp.zeros_like(o_ref)

    o_ref[...] += jnp.sum(x_ref[...], axis=1, keepdims=True, dtype=o_ref.dtype)


def _kernel_lane_scratch(x_ref, o_ref, acc_ref):
    ci = pl.program_id(1)

    @pl.when(ci == 0)
    def _():
        acc_ref[...] = jnp.zeros_like(acc_ref)

    acc_ref[...] += jnp.sum(x_ref[...], axis=1, keepdims=True,
                            dtype=acc_ref.dtype)

    @pl.when(ci == pl.num_programs(1) - 1)
    def _():
        o_ref[...] = acc_ref[...].astype(o_ref.dtype)


# ---------------------------------------------------------------------------
# Tile planning
# ---------------------------------------------------------------------------
_TP_TARGET = 256        # output sublane rows per tile (generic path)
_TQ_TARGET = 2048       # output lanes per tile (generic path)
_TP_LANE_TARGET = 512   # sublane rows per tile (trailing-axis path)


def _divisors(n):
    small, large = [], []
    i = 1
    while i * i <= n:
        if n % i == 0:
            small.append(i)
            if i != n // i:
                large.append(n // i)
        i += 1
    return small + large[::-1]


def _sublane_align(dtype):
    # The reduced axis sits on the input block's sublane axis: sub-32-bit
    # dtypes pack along sublanes, so chunks must respect the packing.
    bits = jnp.dtype(dtype).itemsize * 8
    if bits >= 32:
        return 8
    if bits == 16:
        return 16
    return 32


def _tile_candidates(full, target, align):
    """Legal tile sizes along one axis, largest first: the full extent and/or
    align-multiples <= target."""
    cands = []
    if full <= target:
        cands.append(full)
    t = min(target, (full // align) * align)
    while t >= align:
        if t not in cands:
            cands.append(t)
        t = ((t // 2) // align) * align
    if not cands:
        cands = [full]
    return cands


def _vmem_budget_and_cap():
    try:
        cap = int(pltpu.get_tpu_info().vmem_capacity_bytes)
    except Exception:  # interpret mode / very old runtimes
        cap = 64 * 1024 * 1024
    # Keep the double-buffered working set well under physical VMEM so the
    # compiler has headroom (v7x only has 64 MiB per TC; v5e/v6e have 128 MiB).
    return int(cap * 0.6), cap


def _vmem_limit(footprint, cap):
    # Comfortable headroom over the planned working set, never beyond physical.
    return int(min(cap, max(2 * footprint, 32 * 1024 * 1024)))


def _plan_mid(P, C, Q, in_isize, out_isize, scratch_isize, sub_align, budget):
    """Jointly pick (tp, tq, c_chunk) for the (P, C, Q) path, full-footprint."""
    tq_cands = _tile_candidates(Q, _TQ_TARGET, 128)
    tp_cands = _tile_candidates(P, _TP_TARGET, 8)
    c_cands = sorted({d for d in _divisors(C) if d == C or d % sub_align == 0},
                     reverse=True)

    def footprint(tp, cc, tq):
        f = 2 * tp * cc * tq * in_isize + 2 * tp * tq * out_isize
        if cc < C:          # scratch only exists in the chunked + narrow case
            f += tp * tq * scratch_isize
        return f

    for tq in tq_cands:            # lane-dense output is the biggest lever
        for tp in tp_cands:
            for cc in c_cands:
                if footprint(tp, cc, tq) <= budget:
                    return tp, tq, cc, footprint(tp, cc, tq)
    # Nothing fits (e.g. C prime with a huge minimum chunk): take the smallest
    # legal config and rely on a raised vmem_limit — still correct.
    tp, tq, cc = tp_cands[-1], tq_cands[-1], c_cands[-1]
    return tp, tq, cc, footprint(tp, cc, tq)


def _split_for_megacore_mid(P, Q, tp, tq):
    """Guarantee >= 2 output tiles on the parallel axes when legal (v7x)."""
    if pl.cdiv(P, tp) * pl.cdiv(Q, tq) >= 2:
        return tp, tq
    if tq % 256 == 0:
        return tp, tq // 2      # stays a multiple of 128
    if tp % 16 == 0:
        return tp // 2, tq      # stays a multiple of 8
    return tp, tq


def _plan_lane(P, C, in_isize, out_isize, scratch_isize, budget):
    """Pick (tp, c_chunk) for the trailing-axis (Q == 1) path."""
    tp_cands = _tile_candidates(P, _TP_LANE_TARGET, 8)
    c_cands = sorted({d for d in _divisors(C) if d == C or d % 128 == 0},
                     reverse=True)

    def footprint(tp, cc):
        f = 2 * tp * cc * in_isize + 2 * tp * out_isize
        if cc < C:
            f += tp * scratch_isize
        return f

    for tp in tp_cands:
        for cc in c_cands:
            if footprint(tp, cc) <= budget:
                return tp, cc, footprint(tp, cc)
    tp, cc = tp_cands[-1], c_cands[-1]
    return tp, cc, footprint(tp, cc)


# ---------------------------------------------------------------------------
# Wrapper
# ---------------------------------------------------------------------------
@functools.partial(jax.jit, static_argnames=("dim",))
def sum_pytorch(x, dim=1):
    """Pallas implementation of SumPytorch.forward: squeeze(sum(x, axis=dim))."""
    ndim = x.ndim
    dim = dim % ndim
    shape = x.shape

    C = shape[dim]
    P = math.prod(shape[:dim])
    Q = math.prod(shape[dim + 1:])
    reduced_shape = shape[:dim] + shape[dim + 1:]

    # Degenerate (zero-sized) shapes: nothing to pipeline, let XLA handle it.
    if P == 0 or Q == 0 or C == 0:
        return jnp.squeeze(jnp.sum(x, axis=dim))

    in_dtype = x.dtype
    out_dtype = x.dtype
    acc_dtype = (jnp.float32 if jnp.issubdtype(in_dtype, jnp.floating)
                 else jnp.int32)
    in_isize = jnp.dtype(in_dtype).itemsize
    out_isize = jnp.dtype(out_dtype).itemsize
    acc_isize = jnp.dtype(acc_dtype).itemsize
    # Acc scratch only exists when the reduction is chunked AND the output
    # dtype is narrower than the accumulation dtype.
    scratch_isize = 0 if jnp.dtype(out_dtype) == jnp.dtype(acc_dtype) else acc_isize

    budget, vmem_cap = _vmem_budget_and_cap()
    flops = P * C * Q
    bytes_accessed = P * C * Q * in_isize + P * Q * out_isize

    if Q == 1:
        # ---- Trailing-axis reduction: put C on lanes (lane-dense input). ----
        x2 = x.reshape(P, C)
        tp, cc, fp = _plan_lane(P, C, in_isize, out_isize, scratch_isize, budget)
        if pl.cdiv(P, tp) < 2 and tp % 16 == 0:   # use both TCs on v7x
            tp //= 2
        n_c = C // cc

        if n_c == 1:
            kernel = functools.partial(_kernel_lane_single, acc_dtype=acc_dtype)
            grid = (pl.cdiv(P, tp),)
            in_specs = [pl.BlockSpec((tp, C), lambda pi: (pi, 0))]
            out_spec = pl.BlockSpec((tp, 1), lambda pi: (pi, 0))
            scratch = []
            semantics = ("parallel",)
        else:
            grid = (pl.cdiv(P, tp), n_c)
            in_specs = [pl.BlockSpec((tp, cc), lambda pi, ci: (pi, ci))]
            out_spec = pl.BlockSpec((tp, 1), lambda pi, ci: (pi, 0))
            semantics = ("parallel", "arbitrary")
            if scratch_isize == 0:
                kernel, scratch = _kernel_lane_inplace, []
            else:
                kernel = _kernel_lane_scratch
                scratch = [pltpu.VMEM((tp, 1), acc_dtype)]

        out2 = pl.pallas_call(
            kernel,
            out_shape=jax.ShapeDtypeStruct((P, 1), out_dtype),
            grid=grid,
            in_specs=in_specs,
            out_specs=out_spec,
            scratch_shapes=scratch,
            compiler_params=pltpu.CompilerParams(
                dimension_semantics=semantics,
                vmem_limit_bytes=_vmem_limit(fp, vmem_cap),
            ),
            cost_estimate=pl.CostEstimate(
                flops=flops, bytes_accessed=bytes_accessed, transcendentals=0),
        )(x2)
        return jnp.squeeze(out2.reshape(reduced_shape))

    # ---- Generic path: (P, C, Q), reduce the middle (sublane) axis. ----
    # NOTE: for 1 < Q < 128 this is correct but the output stores are masked;
    # repacking to a lane-dense layout is a possible further optimization.
    x3 = x.reshape(P, C, Q)
    sub_align = _sublane_align(in_dtype)
    tp, tq, cc, fp = _plan_mid(P, C, Q, in_isize, out_isize, scratch_isize,
                               sub_align, budget)
    tp, tq = _split_for_megacore_mid(P, Q, tp, tq)
    n_c = C // cc

    if n_c == 1:
        kernel = functools.partial(_kernel_mid_single, acc_dtype=acc_dtype)
        grid = (pl.cdiv(P, tp), pl.cdiv(Q, tq))
        in_specs = [pl.BlockSpec((tp, C, tq), lambda pi, qi: (pi, 0, qi))]
        out_spec = pl.BlockSpec((tp, tq), lambda pi, qi: (pi, qi))
        scratch = []
        semantics = ("parallel", "parallel")
    else:
        grid = (pl.cdiv(P, tp), pl.cdiv(Q, tq), n_c)
        in_specs = [pl.BlockSpec((tp, cc, tq), lambda pi, qi, ci: (pi, ci, qi))]
        out_spec = pl.BlockSpec((tp, tq), lambda pi, qi, ci: (pi, qi))
        semantics = ("parallel", "parallel", "arbitrary")
        if scratch_isize == 0:
            kernel, scratch = _kernel_mid_inplace, []
        else:
            kernel = _kernel_mid_scratch
            scratch = [pltpu.VMEM((tp, tq), acc_dtype)]

    out2 = pl.pallas_call(
        kernel,
        out_shape=jax.ShapeDtypeStruct((P, Q), out_dtype),
        grid=grid,
        in_specs=in_specs,
        out_specs=out_spec,
        scratch_shapes=scratch,
        compiler_params=pltpu.CompilerParams(
            dimension_semantics=semantics,
            vmem_limit_bytes=_vmem_limit(fp, vmem_cap),
        ),
        cost_estimate=pl.CostEstimate(
            flops=flops, bytes_accessed=bytes_accessed, transcendentals=0),
    )(x3)

    # Back to the PyTorch result shape, then squeeze ALL size-1 dims
    # (matching np.squeeze in the reference module).
    return jnp.squeeze(out2.reshape(reduced_shape))


if __name__ == "__main__":
    key = jax.random.PRNGKey(0)
    x = jax.random.normal(key, (2, 4, 16, 16), dtype=jnp.float32)

    # Module's configured case: reduce the channel axis (dim=1).
    y = sum_pytorch(x, dim=1)
    jax.block_until_ready(y)
    ref = jnp.squeeze(jnp.sum(x, axis=1))
    assert y.shape == ref.shape, (y.shape, ref.shape)
    assert jnp.allclose(y, ref, atol=1e-5, rtol=1e-5)

    # Trailing-axis (lane-reduction) path.
    y3 = sum_pytorch(x, dim=3)
    jax.block_until_ready(y3)
    ref3 = jnp.squeeze(jnp.sum(x, axis=3))
    assert y3.shape == ref3.shape, (y3.shape, ref3.shape)
    assert jnp.allclose(y3, ref3, atol=1e-5, rtol=1e-5)

    print("KERNEL_OK")
</pallas_src>

<mosaic_0001>
module attributes {stable_mosaic.version = 11 : i64} {
  func.func @_kernel_mid_single(%arg0: i32, %arg1: i32, %arg2: memref<2x4x128xf32, #tpu.memory_space<vmem>>, %arg3: memref<2x128xf32, #tpu.memory_space<vmem>>) attributes {dimension_semantics = [#tpu.dimension_semantics<parallel>, #tpu.dimension_semantics<parallel>], iteration_bounds = array<i64: 1, 2>, scalar_prefetch = 0 : i64, scratch_operands = 0 : i64, tpu.core_type = #tpu.core_type<tc>, window_params = [{transform_indices = @transform_0, window_bounds = array<i64: 2, 4, 128>}, {transform_indices = @transform_1, window_bounds = array<i64: 2, 128>}]} {
    %c0 = arith.constant 0 : index
    %c0_0 = arith.constant 0 : index
    %c0_1 = arith.constant 0 : index
    %0 = vector.load %arg2[%c0, %c0_0, %c0_1] : memref<2x4x128xf32, #tpu.memory_space<vmem>>, vector<2x4x128xf32>
    %cst = arith.constant dense<0.000000e+00> : vector<2x128xf32>
    %1 = vector.multi_reduction <add>, %0, %cst [1] : vector<2x4x128xf32> to vector<2x128xf32>
    %c0_2 = arith.constant 0 : index
    %c0_3 = arith.constant 0 : index
    %2 = vector.load %arg3[%c0_2, %c0_3] : memref<2x128xf32, #tpu.memory_space<vmem>>, vector<2x128xf32>
    tpu.vector_store %arg3[%c0_2, %c0_3], %1 {strides = array<i32>} : memref<2x128xf32, #tpu.memory_space<vmem>>, vector<2x128xf32>,
    return
  }
  func.func @transform_0(%arg0: i32, %arg1: i32) -> (i32, i32, i32) {
    %c0_i32 = arith.constant 0 : i32
    %c0_i32_0 = arith.constant 0 : i32
    return %arg0, %c0_i32, %arg1 : i32, i32, i32
  }
  func.func @transform_1(%arg0: i32, %arg1: i32) -> (i32, i32) {
    %c0_i32 = arith.constant 0 : i32
    return %arg0, %arg1 : i32, i32
  }
}

</mosaic_0001>

<bundles_post_ra>
// kernel: sum_pytorch.1
= control target key start
LH: loop header
LB: loop body
LE: loop exit
PB: predicated region body
PF: predicated region fallthrough
CT: control target
= control target key end

     0   :  { %s397_s6 = smov 0   ;;  %s399_s7 = smov 0   ;;  %s463_s0 = inlined_call_operand.vmem [shape: f32[2,4,256], index: 0, kind: input, shape index: {}]   ;;  %s464_s1 = inlined_call_operand.vmem [shape: f32[2,256], index: 1, kind: output, shape index: {}]  }
   0x1   :  { %s401_s8 = smov 0   ;;  %s403_s9 = smov 0  }
   0x2   :  { %s405_s10 = smov 0  }
   0x3 LB: > { %s20_s11 = sadd.s32 1, %s381_s9  ;;  %p39_p1 = scmp.ne.s32.totalorder %s373_s7, %s369_s6  ;;  %s385_s10 = sphi %s405_s10, %s11_s10   ;;  %s381_s9 = sphi %s403_s9, %s468_s9   ;;  %s377_s8 = sphi %s401_s8, %s467_s8   ;;  %s373_s7 = sphi %s399_s7, %s466_s7   ;;  %s369_s6 = sphi %s397_s6, %s465_s6  }
   0x4   : > { %p21_p0 = scmp.ge.s32.totalorder %s20_s11, 2  ;;  %p40_p2 = scmp.eq.s32.totalorder %s385_s10, 0 }
   0x5   : > { %s32_s13 = sadd.s32 1, %s373_s7  ;;  %p299_p5 = scmp.ge.s32.totalorder %s385_s10, 2 }
   0x6   : > { %s470_s11 = smov (%p21_p0, %s20_s11), 0  ;;  %p41_p3 = por %p40_p2, %p39_p1 }
   0x7   : > { %s28_s12 = ssub.s32 %s381_s9, %s470_s11  ;;  %93 = sbr.rel (%p299_p5) target bundleno = 21 (0x15), region = 16 }
   0x8   : > { %p30_p4 = scmp.eq.s32.totalorder %s28_s12, 0 }
   0xa   : > { %s432_s14 = scalar_select %p30_p4, %s373_s7, %s32_s13  }
   0xe   : > { %96 = sbr.rel (!%p41_p3) target bundleno = 21 (0x15), region = 20  ;;  %s98_s15 = sand.u32 (%p41_p3), 1, %s373_s7  }
   0xf   : > { %s301_s16 = sshll.u32 (%p41_p3), %s381_s9, 2  ;;  %s300_s17 = sshll.u32 (%p41_p3), %s98_s15, 3 }
  0x10   : > { %s105_s20 = scalar_lea.vmem (%p41_p3), %s463_s0, %s301_s16  ;;  %s100_s21 = scalar_lea.vmem (%p41_p3), [#allocation2], %s300_s17 }
  0x11   : > { %v121_v0 = vld [vmem:[%s105_s20] sm:$0xf] (%p41_p3)  ;;  %v123_v1 = vld [vmem:[%s105_s20 + $0x8] sm:$0xf] (%p41_p3) }
  0x12   : > { %122 = vst [vmem:[%s100_s21] sm:$0xf] (%p41_p3), %v121_v0  ;;  %124 = vst [vmem:[%s100_s21 + $0x4] sm:$0xf] (%p41_p3), %v123_v1 }
  0x15 PF: > { %p302_p6 = scmp.ge.s32.totalorder %s385_s10, 1  ;;  %p150_p7 = scmp.lt.s32.totalorder %s385_s10, 3 }
  0x17   : > { %p151_p8 = pnand %p302_p6, %p150_p7 }
  0x18   : > { %s157_s22 = sand.u32 (!%p151_p8), 1, %s369_s6   ;;  %vm190_vm0 = vcmask (!%p151_p8), 1043456   ;;  %p182_p9 = scmp.lt.s32.totalorder (!%p151_p8), %s377_s8, 1  ;;  %vm207_vm1 = vcmask (!%p151_p8), 1041409  }
  0x19   : > { %154 = sbr.rel (%p151_p8) target bundleno = 43 (0x2b), region = 61  ;;  %s303_s23 = sshll.u32 (!%p151_p8), %s157_s22, 3 }
  0x1a   : > { %s159_s24 = scalar_lea.vmem (!%p151_p8), [#allocation2], %s303_s23 }
  0x1b   : > { %v188_v2 = vld [vmem:[%s159_s24] sm:$0xf] (!%p151_p8)  ;;  %v189_v3 = vld [vmem:[%s159_s24 + $0x4] sm:$0xf] (!%p151_p8) }
  0x1c   : > { %v191_v4 = vsel (!%p151_p8), %vm190_vm0, %v188_v2, 0.0  ;;  %v198_v5 = vsel (!%p151_p8), %vm190_vm0, %v189_v3, 0.0 }
  0x1d   : > { %v192_v6 = vrot.slane (!%p151_p8), %v191_v4, 4  ;;  %v199_v7 = vrot.slane (!%p151_p8), %v198_v5, 4 }
  0x1f   : > { %v193_v8 = vadd.f32 (!%p151_p8), %v192_v6, %v191_v4  ;;  %v200_v9 = vadd.f32 (!%p151_p8), %v199_v7, %v198_v5 }
  0x20   : > { %s472_s8 = smov (!%p182_p9, %s377_s8), 1 }
  0x21   : > { %v194_v10 = vrot.slane %v193_v8, 2  ;;  %v201_v11 = vrot.slane %v200_v9, 2  ;;  %s304_s25 = sshll.u32 %s472_s8, 1 }
  0x22   : > { %s187_s28 = scalar_lea.vmem %s464_s1, %s304_s25 }
  0x23   : > { %v195_v12 = vadd.f32 %v194_v10, %v193_v8  ;;  %v202_v13 = vadd.f32 %v201_v11, %v200_v9 }
  0x25   : > { %v196_v14 = vrot.slane %v195_v12, 1  ;;  %v203_v15 = vrot.slane %v202_v13, 1 }
  0x27   : > { %v197_v16 = vadd.f32 %v196_v14, %v195_v12  ;;  %v204_v17 = vadd.f32 %v203_v15, %v202_v13 }
  0x29   : > { %v208_v18 = vsel %vm207_vm1, %v204_v17, %v197_v16 }
  0x2a   : > { %210 = vst [vmem:[%s187_s28] sm:$0x3] %v208_v18 }
  0x2b PF: > { %s11_s10 = sadd.s32 1, %s385_s10   ;;  %s465_s6 = smov %s373_s7 }
  0x2c   : > { %p8_p10 = scmp.ge.s32.totalorder %s11_s10, 4   ;;  %s466_s7 = smov %s432_s14 }
  0x2d   : > { %s467_s8 = smov %s381_s9  ;;  %s468_s9 = smov %s470_s11 }
  0x2e   :  { %10 = sbr.rel (!%p8_p10) target bundleno = 3 (0x3), region = 100 }

</bundles_post_ra>
